<compile_context>
chip_gen: v5e
topology: v5e:2x2
jax: 0.10.0
libtpu: 0.0.40
codegen_flags: <defaults>
</compile_context>

<pallas_src>
import jax
import jax.numpy as jnp
from jax.experimental import pallas as pl
from jax.experimental.pallas import tpu as pltpu


def _spe_rbf_kernel(log_ref, lat_ref, centres_t_ref, alpha_ref, log_sig_ref,
                    rep_ref, x_ref, o_ref):
    # --- x_ind: mean over batch (axis 0) and time (axis -1) -> (N, 1) columns.
    lon = jnp.mean(jnp.mean(log_ref[...].astype(jnp.float32), axis=0),
                   axis=-1, keepdims=True)                       # (N, 1)
    lat = jnp.mean(jnp.mean(lat_ref[...].astype(jnp.float32), axis=0),
                   axis=-1, keepdims=True)                       # (N, 1)

    c = centres_t_ref[...].astype(jnp.float32)                   # (2, N)
    c_lon = c[0:1, :]                                            # (1, N)
    c_lat = c[1:2, :]                                            # (1, N)

    # --- Pairwise Euclidean distances between x_ind rows and centres: (N, N).
    d2 = (lon - c_lon) ** 2 + (lat - c_lat) ** 2                 # (N, N)
    dist = jnp.sqrt(d2)

    # --- RBF head: (dist @ alpha) / exp(log_sigmas), quadratic basis.
    z = jnp.dot(dist, alpha_ref[...].astype(jnp.float32),
                preferred_element_type=jnp.float32)              # (N, D)
    z = z / jnp.exp(log_sig_ref[...].astype(jnp.float32))        # (1, D) bcast
    embed = z * z                                                # (N, D)

    # --- Replicate embed across T in the lane-dense (N, T*D) layout via MXU
    #     (rep[d, t*D + e] = [d == e]), avoiding in-kernel reshape/concat.
    embed_rep = jnp.dot(embed, rep_ref[...],
                        preferred_element_type=jnp.float32)      # (N, T*D)

    o_ref[...] = (x_ref[...].astype(jnp.float32) + embed_rep).astype(o_ref.dtype)


def spatial_positional_encoding_rbf(x, log1, lat1, centres, alpha, log_sigmas):
    """x: (B, N, T, D); log1/lat1: (B, N, T); centres: (N, 2);
       alpha: (N, D); log_sigmas: (D,).  Returns (B, N, T, D)."""
    B, N, T, D = x.shape
    assert centres.shape == (N, 2)
    assert alpha.shape == (N, D)
    assert log_sigmas.shape == (D,)

    x_flat = x.reshape(B, N, T * D)            # contiguous -> free reshape
    centres_t = centres.T                      # (2, N): avoids in-kernel vxpose
    log_sig_row = log_sigmas.reshape(1, D)
    rep = jnp.tile(jnp.eye(D, dtype=jnp.float32), (1, T))   # (D, T*D)

    full3 = lambda b: (0, 0, 0)
    full2 = lambda b: (0, 0)

    out_flat = pl.pallas_call(
        _spe_rbf_kernel,
        out_shape=jax.ShapeDtypeStruct((B, N, T * D), x.dtype),
        grid=(B,),
        in_specs=[
            pl.BlockSpec((B, N, T), full3),                      # log1 (resident)
            pl.BlockSpec((B, N, T), full3),                      # lat1 (resident)
            pl.BlockSpec((2, N), full2),                         # centres^T
            pl.BlockSpec((N, D), full2),                         # alpha
            pl.BlockSpec((1, D), full2),                         # log_sigmas
            pl.BlockSpec((D, T * D), full2),                     # replication matrix
            pl.BlockSpec((None, N, T * D), lambda b: (b, 0, 0)),  # x slab
        ],
        out_specs=pl.BlockSpec((None, N, T * D), lambda b: (b, 0, 0)),
        compiler_params=pltpu.CompilerParams(
            dimension_semantics=("parallel",)),
    )(log1, lat1, centres_t, alpha, log_sig_row, rep, x_flat)

    return out_flat.reshape(B, N, T, D)


def _reference(x, log1, lat1, centres, alpha, log_sigmas):
    """Pure-JAX reference mirroring the PyTorch module (eval mode)."""
    lon = log1.mean(0).mean(-1)                               # (N,)
    lat = lat1.mean(0).mean(-1)                               # (N,)
    x_ind = jnp.stack([lon, lat], axis=-1)                    # (N, 2)
    diff = x_ind[:, None, :] - centres[None, :, :]            # (N, N, 2)
    dist = jnp.sqrt(jnp.sum(diff ** 2, axis=-1))              # (N, N)
    z = (dist @ alpha) / jnp.exp(log_sigmas)[None, :]         # (N, D)
    embed = z ** 2                                            # quadratic basis
    return x + embed[None, :, None, :]


if __name__ == "__main__":
    B, N, T, D = 2, 16, 8, 32   # batch, num_vertices, timestamps, d_model

    key = jax.random.PRNGKey(0)
    ks = jax.random.split(key, 6)

    x = jax.random.normal(ks[0], (B, N, T, D), jnp.float32)
    log1 = jax.random.normal(ks[1], (B, N, T), jnp.float32)      # longitudes
    lat1 = jax.random.normal(ks[2], (B, N, T), jnp.float32)      # latitudes

    # RBF parameters: centres1 ~ N(0,1); alpha arbitrary; log_sigmas near init 0.
    centres = jax.random.normal(ks[3], (N, 2), jnp.float32)
    alpha = jax.random.normal(ks[4], (N, D), jnp.float32)
    log_sigmas = 0.1 * jax.random.normal(ks[5], (D,), jnp.float32)

    out = spatial_positional_encoding_rbf(x, log1, lat1, centres, alpha, log_sigmas)
    out = jax.block_until_ready(out)

    ref = _reference(x, log1, lat1, centres, alpha, log_sigmas)
    assert out.shape == (B, N, T, D)
    assert jnp.allclose(out, ref, atol=1e-4, rtol=1e-4), "mismatch vs reference"
    print("KERNEL_OK")
</pallas_src>

<mosaic_0001>
module attributes {stable_mosaic.version = 11 : i64} {
  func.func @_spe_rbf_kernel(%arg0: i32, %arg1: memref<2x16x8xf32, #tpu.memory_space<vmem>>, %arg2: memref<2x16x8xf32, #tpu.memory_space<vmem>>, %arg3: memref<2x16xf32, #tpu.memory_space<vmem>>, %arg4: memref<16x32xf32, #tpu.memory_space<vmem>>, %arg5: memref<1x32xf32, #tpu.memory_space<vmem>>, %arg6: memref<32x256xf32, #tpu.memory_space<vmem>>, %arg7: memref<1x16x256xf32, #tpu.memory_space<vmem>>, %arg8: memref<1x16x256xf32, #tpu.memory_space<vmem>>) attributes {dimension_semantics = [#tpu.dimension_semantics<parallel>], iteration_bounds = array<i64: 2>, scalar_prefetch = 0 : i64, scratch_operands = 0 : i64, tpu.core_type = #tpu.core_type<tc>, window_params = [{pipeline_mode = #tpu.pipeline_mode<synchronous>, transform_indices = @transform_0, window_bounds = array<i64: 2, 16, 8>}, {pipeline_mode = #tpu.pipeline_mode<synchronous>, transform_indices = @transform_1, window_bounds = array<i64: 2, 16, 8>}, {pipeline_mode = #tpu.pipeline_mode<synchronous>, transform_indices = @transform_2, window_bounds = array<i64: 2, 16>}, {pipeline_mode = #tpu.pipeline_mode<synchronous>, transform_indices = @transform_3, window_bounds = array<i64: 16, 32>}, {pipeline_mode = #tpu.pipeline_mode<synchronous>, transform_indices = @transform_4, window_bounds = array<i64: 1, 32>}, {pipeline_mode = #tpu.pipeline_mode<synchronous>, transform_indices = @transform_5, window_bounds = array<i64: 32, 256>}, {transform_indices = @transform_6, window_bounds = array<i64: 1, 16, 256>}, {transform_indices = @transform_7, window_bounds = array<i64: 1, 16, 256>}]} {
    %c0 = arith.constant 0 : index
    %c0_0 = arith.constant 0 : index
    %c0_1 = arith.constant 0 : index
    %0 = vector.load %arg1[%c0, %c0_0, %c0_1] : memref<2x16x8xf32, #tpu.memory_space<vmem>>, vector<2x16x8xf32>
    %cst = arith.constant dense<0.000000e+00> : vector<16x8xf32>
    %1 = vector.multi_reduction <add>, %0, %cst [0] : vector<2x16x8xf32> to vector<16x8xf32>
    %cst_2 = arith.constant 2.000000e+00 : f32
    %2 = vector.broadcast %cst_2 : f32 to vector<16x8xf32>
    %3 = arith.divf %1, %2 : vector<16x8xf32>
    %cst_3 = arith.constant dense<0.000000e+00> : vector<16xf32>
    %4 = vector.multi_reduction <add>, %3, %cst_3 [1] : vector<16x8xf32> to vector<16xf32>
    %5 = vector.shape_cast %4 : vector<16xf32> to vector<16x1xf32>
    %cst_4 = arith.constant 8.000000e+00 : f32
    %6 = vector.broadcast %cst_4 : f32 to vector<16x1xf32>
    %7 = arith.divf %5, %6 : vector<16x1xf32>
    %c0_5 = arith.constant 0 : index
    %c0_6 = arith.constant 0 : index
    %c0_7 = arith.constant 0 : index
    %8 = vector.load %arg2[%c0_5, %c0_6, %c0_7] : memref<2x16x8xf32, #tpu.memory_space<vmem>>, vector<2x16x8xf32>
    %cst_8 = arith.constant dense<0.000000e+00> : vector<16x8xf32>
    %9 = vector.multi_reduction <add>, %8, %cst_8 [0] : vector<2x16x8xf32> to vector<16x8xf32>
    %cst_9 = arith.constant 2.000000e+00 : f32
    %10 = vector.broadcast %cst_9 : f32 to vector<16x8xf32>
    %11 = arith.divf %9, %10 : vector<16x8xf32>
    %cst_10 = arith.constant dense<0.000000e+00> : vector<16xf32>
    %12 = vector.multi_reduction <add>, %11, %cst_10 [1] : vector<16x8xf32> to vector<16xf32>
    %13 = vector.shape_cast %12 : vector<16xf32> to vector<16x1xf32>
    %cst_11 = arith.constant 8.000000e+00 : f32
    %14 = vector.broadcast %cst_11 : f32 to vector<16x1xf32>
    %15 = arith.divf %13, %14 : vector<16x1xf32>
    %c0_12 = arith.constant 0 : index
    %c0_13 = arith.constant 0 : index
    %16 = vector.load %arg3[%c0_12, %c0_13] : memref<2x16xf32, #tpu.memory_space<vmem>>, vector<2x16xf32>
    %17 = vector.extract_strided_slice %16 {offsets = [0, 0], sizes = [1, 16], strides = [1, 1]} : vector<2x16xf32> to vector<1x16xf32>
    %18 = vector.extract_strided_slice %16 {offsets = [1, 0], sizes = [1, 16], strides = [1, 1]} : vector<2x16xf32> to vector<1x16xf32>
    %19 = vector.broadcast %7 : vector<16x1xf32> to vector<16x16xf32>
    %20 = vector.broadcast %17 : vector<1x16xf32> to vector<16x16xf32>
    %21 = arith.subf %19, %20 : vector<16x16xf32>
    %22 = arith.mulf %21, %21 : vector<16x16xf32>
    %23 = vector.broadcast %15 : vector<16x1xf32> to vector<16x16xf32>
    %24 = vector.broadcast %18 : vector<1x16xf32> to vector<16x16xf32>
    %25 = arith.subf %23, %24 : vector<16x16xf32>
    %26 = arith.mulf %25, %25 : vector<16x16xf32>
    %27 = arith.addf %22, %26 : vector<16x16xf32>
    %28 = math.sqrt %27 : vector<16x16xf32>
    %c0_14 = arith.constant 0 : index
    %c0_15 = arith.constant 0 : index
    %29 = vector.load %arg4[%c0_14, %c0_15] : memref<16x32xf32, #tpu.memory_space<vmem>>, vector<16x32xf32>
    %cst_16 = arith.constant dense<0.000000e+00> : vector<16x32xf32>
    %30 = tpu.matmul %28, %29, %cst_16 {dimension_numbers = #tpu.dot_dimension_numbers<[1], [0], [0], [1], [0, 0, 1, 1], [], []>} : vector<16x16xf32>, vector<16x32xf32>, vector<16x32xf32> -> vector<16x32xf32>
    %c0_17 = arith.constant 0 : index
    %c0_18 = arith.constant 0 : index
    %31 = vector.load %arg5[%c0_17, %c0_18] : memref<1x32xf32, #tpu.memory_space<vmem>>, vector<1x32xf32>
    %32 = math.exp %31 : vector<1x32xf32>
    %33 = vector.broadcast %32 : vector<1x32xf32> to vector<16x32xf32>
    %34 = arith.divf %30, %33 : vector<16x32xf32>
    %35 = arith.mulf %34, %34 : vector<16x32xf32>
    %c0_19 = arith.constant 0 : index
    %c0_20 = arith.constant 0 : index
    %36 = vector.load %arg6[%c0_19, %c0_20] : memref<32x256xf32, #tpu.memory_space<vmem>>, vector<32x256xf32>
    %cst_21 = arith.constant dense<0.000000e+00> : vector<16x256xf32>
    %37 = tpu.matmul %35, %36, %cst_21 {dimension_numbers = #tpu.dot_dimension_numbers<[1], [0], [0], [1], [0, 0, 1, 1], [], []>} : vector<16x32xf32>, vector<32x256xf32>, vector<16x256xf32> -> vector<16x256xf32>
    %c0_22 = arith.constant 0 : index
    %c0_23 = arith.constant 0 : index
    %c0_24 = arith.constant 0 : index
    %38 = vector.load %arg7[%c0_22, %c0_23, %c0_24] : memref<1x16x256xf32, #tpu.memory_space<vmem>>, vector<1x16x256xf32>
    %39 = vector.shape_cast %38 : vector<1x16x256xf32> to vector<16x256xf32>
    %40 = arith.addf %39, %37 : vector<16x256xf32>
    %c0_25 = arith.constant 0 : index
    %c0_26 = arith.constant 0 : index
    %c0_27 = arith.constant 0 : index
    %41 = vector.load %arg8[%c0_25, %c0_26, %c0_27] : memref<1x16x256xf32, #tpu.memory_space<vmem>>, vector<1x16x256xf32>
    %42 = vector.shape_cast %41 : vector<1x16x256xf32> to vector<16x256xf32>
    %43 = vector.shape_cast %40 : vector<16x256xf32> to vector<1x16x256xf32>
    tpu.vector_store %arg8[%c0_25, %c0_26, %c0_27], %43 {strides = array<i32>} : memref<1x16x256xf32, #tpu.memory_space<vmem>>, vector<1x16x256xf32>,
    return
  }
  func.func @transform_0(%arg0: i32) -> (i32, i32, i32) {
    %c0_i32 = arith.constant 0 : i32
    %c0_i32_0 = arith.constant 0 : i32
    %c0_i32_1 = arith.constant 0 : i32
    %c0_i32_2 = arith.constant 0 : i32
    return %c0_i32, %c0_i32_0, %c0_i32_1 : i32, i32, i32
  }
  func.func @transform_1(%arg0: i32) -> (i32, i32, i32) {
    %c0_i32 = arith.constant 0 : i32
    %c0_i32_0 = arith.constant 0 : i32
    %c0_i32_1 = arith.constant 0 : i32
    %c0_i32_2 = arith.constant 0 : i32
    return %c0_i32, %c0_i32_0, %c0_i32_1 : i32, i32, i32
  }
  func.func @transform_2(%arg0: i32) -> (i32, i32) {
    %c0_i32 = arith.constant 0 : i32
    %c0_i32_0 = arith.constant 0 : i32
    %c0_i32_1 = arith.constant 0 : i32
    return %c0_i32, %c0_i32_0 : i32, i32
  }
  func.func @transform_3(%arg0: i32) -> (i32, i32) {
    %c0_i32 = arith.constant 0 : i32
    %c0_i32_0 = arith.constant 0 : i32
    %c0_i32_1 = arith.constant 0 : i32
    return %c0_i32, %c0_i32_0 : i32, i32
  }
  func.func @transform_4(%arg0: i32) -> (i32, i32) {
    %c0_i32 = arith.constant 0 : i32
    %c0_i32_0 = arith.constant 0 : i32
    %c0_i32_1 = arith.constant 0 : i32
    return %c0_i32, %c0_i32_0 : i32, i32
  }
  func.func @transform_5(%arg0: i32) -> (i32, i32) {
    %c0_i32 = arith.constant 0 : i32
    %c0_i32_0 = arith.constant 0 : i32
    %c0_i32_1 = arith.constant 0 : i32
    return %c0_i32, %c0_i32_0 : i32, i32
  }
  func.func @transform_6(%arg0: i32) -> (i32, i32, i32) {
    %c0_i32 = arith.constant 0 : i32
    %c0_i32_0 = arith.constant 0 : i32
    %c0_i32_1 = arith.constant 0 : i32
    return %arg0, %c0_i32, %c0_i32_0 : i32, i32, i32
  }
  func.func @transform_7(%arg0: i32) -> (i32, i32, i32) {
    %c0_i32 = arith.constant 0 : i32
    %c0_i32_0 = arith.constant 0 : i32
    %c0_i32_1 = arith.constant 0 : i32
    return %arg0, %c0_i32, %c0_i32_0 : i32, i32, i32
  }
}

</mosaic_0001>

<bundles_post_ra>
// kernel: tpu_custom_call.1
= control target key start
LH: loop header
LB: loop body
LE: loop exit
PB: predicated region body
PF: predicated region fallthrough
CT: control target
= control target key end

     0   :  { %s1139_s0 = inlined_call_operand.vmem [shape: f32[2,16,8], index: 0, kind: input, shape index: {}]   ;;  %s1140_s1 = inlined_call_operand.vmem [shape: f32[2,16,8], index: 1, kind: input, shape index: {}]   ;;  %s1141_s2 = inlined_call_operand.hbm [shape: f32[2,16], index: 2, kind: input, shape index: {}]   ;;  %s1142_s3 = inlined_call_operand.vmem [shape: f32[16,32], index: 3, kind: input, shape index: {}]   ;;  %s1143_s4 = inlined_call_operand.vmem [shape: f32[1,32], index: 4, kind: input, shape index: {}]   ;;  %s1144_s5 = inlined_call_operand.vmem [shape: f32[32,256], index: 5, kind: input, shape index: {}]   ;;  %s1145_s6 = inlined_call_operand.hbm [shape: f32[2,16,256], index: 6, kind: input, shape index: {}]   ;;  %s1146_s7 = inlined_call_operand.hbm [shape: f32[2,16,256], index: 7, kind: output, shape index: {}]  }
   0x1   :  { %1150 = sst [smem:[#allocation14_spill]] %s1141_s2 }
   0x2   :  { %12 = vsyncpa [#allocation3], 0 }
   0x3   :  { %13 = vsyncpa [#allocation6], 0 }
   0x4   :  { %15 = vsyncpa [#allocation6 + $0x1], 0 }
   0x5   :  { %16 = vsyncpa [#allocation4], 0 }
   0x6   :  { %18 = vsyncpa [#allocation4 + $0x1], 0  ;;  %s918_s24 = smov 0   ;;  %s920_s25 = smov 0  }
   0x7   :  { %s922_s26 = smov 0   ;;  %s924_s27 = smov 0  }
   0x8 LB: > { %1151 = sst [smem:[#allocation11_spill]] %s865_s26  ;;  %s939_s28 = sadd.s32 4294967295, %s869_s27   ;;  %s869_s27 = sphi %s924_s27, %s1162_s27   ;;  %s865_s26 = sphi %s922_s26, %s1164_s26   ;;  %s861_s25 = sphi %s920_s25, %s1166_s25   ;;  %s857_s24 = sphi %s918_s24, %s1165_s24  }
   0x9   : > { %s636_s29 = sadd.s32 4294967294, %s869_s27   ;;  %s943_s30 = sadd.s32 1, %s869_s27  }
   0xa   : > { %1152 = sst [smem:[#allocation12_spill]] %s943_s30  ;;  %s157_s8 = sadd.s32 1, %s865_s26 }
   0xb   : > { %s154_s9 = ssub.s32 %s869_s27, %s943_s30  ;;  %p164_p0 = scmp.ne.s32.totalorder %s865_s26, %s861_s25 }
   0xc   : > { %p155_p1 = scmp.eq.s32.totalorder %s154_s9, 0  ;;  %p165_p2 = scmp.eq.s32.totalorder %s869_s27, 0 }
   0xd   : > { %p170_p3 = scmp.ne.s32.totalorder %s861_s25, %s857_s24  ;;  %p171_p4 = scmp.eq.s32.totalorder %s939_s28, 0 }
   0xe   : > { %s955_s10 = scalar_select %p155_p1, %s865_s26, %s157_s8  }
   0xf   : > { %p957_p5 = por %p165_p2, %p164_p0  ;;  %p963_p6 = por %p171_p4, %p170_p3 }
  0x10   : > { %1153 = sst [smem:[#allocation13_spill]] %s955_s10  ;;  %p194_p7 = scmp.eq.s32.totalorder %s939_s28, 1 }
  0x11   : > { %p200_p8 = scmp.eq.s32.totalorder %s636_s29, 1  ;;  %p637_p9 = scmp.ge.s32.totalorder %s869_s27, 1 }
  0x12   : > { %p207_p10 = scmp.lt.s32.totalorder %s869_s27, 3  ;;  %p970_p11 = por %p194_p7, %p164_p0 }
  0x13   : > { %p974_p12 = por %p200_p8, %p170_p3  ;;  %s1159_s2 = sld [smem:[#allocation14_spill]] }
  0x14   : > { %p978_p13 = pnand %p637_p9, %p207_p10  ;;  %s871_s19 = smov [#allocation2]  }
  0x15   : > { %s227_s20 = sshll.u32 %s871_s19, 4  ;;  %p685_p3 = scmp.lt.s32.totalorder %s869_s27, 2  ;;  %s228_s20 = int_to_ptr.vmem [resolvable:$true] %s227_s20 }
  0x16   : > { %p672_p1 = pneg %p978_p13  ;;  %s247_s21 = sand.u32 1, %s865_s26  }
  0x17   : > { %p994_p7 = pnand %p685_p3, %p957_p5  ;;  %s640_s23 = sshll.u32 %s247_s21, 5 }
  0x18   : > { %p673_p2 = pnand %p672_p1, %p171_p4  ;;  %s658_s29 = sshll.u32 %s869_s27, 5 }
  0x19   : > { %s225_s18 = sshll.u32 %s1159_s2, 4  ;;  %s256_s16 = scalar_lea.hbm %s1145_s6, %s658_s29  ;;  %s226_s18 = int_to_ptr.hbm [resolvable:$true] %s225_s18 }
  0x1a   : > { %675 = dma.hbm_to_vmem [thread:$0]  (!%p673_p2), %s226_s18, 32, %s228_s20, [#allocation3]  }
  0x1b   : > { %s257_s17 = sshll.u32 %s256_s16, 4  ;;  %s251_s19 = scalar_lea.vmem [#allocation5], %s640_s23  ;;  %s258_s17 = int_to_ptr.hbm [resolvable:$true] %s257_s17 }
  0x1c   : > { %s259_s2 = sshll.u32 %s251_s19, 4  ;;  %s248_s10 = scalar_lea.sflag [#allocation6], %s247_s21  ;;  %s260_s2 = int_to_ptr.vmem [resolvable:$true] %s259_s2 }
  0x1d   : > { %s769_s26 = sshra.s32 %s258_s17, 4  ;;  %p773_p8 = pneg %p994_p7  ;;  %s770_s26 = int_to_ptr.hbm [resolvable:$true] %s769_s26 }
  0x1e   : > { %s771_s11 = scalar_lea.hbm %s770_s26, 32  ;;  %s776_s30 = scalar_lea.hbm %s1145_s6, 64 }
  0x1f   : > { %p772_p5 = scmp.ne.s32.totalorder %s770_s26, %s771_s11  ;;  %p777_p1 = scmp.lt.s32.totalorder %s770_s26, %s1145_s6 }
  0x20   : > { %p778_p2 = scmp.lt.s32.totalorder %s776_s30, %s771_s11 }
  0x21   : > { %p774_p9 = pnand %p773_p8, %p772_p5 }
  0x22   : > { %p779_p3 = por %p778_p2, %p777_p1 }
  0x23   : > { %p775_p10 = pneg %p774_p9 }
  0x25   : > { %p780_p0 = pnand %p779_p3, %p775_p10 }
  0x27   : > { %783 = shalt.err (!%p780_p0)
}
  0x28   : > { %s872_s21 = smov 256   ;;  %s873_s23 = smov 16  }
  0x29   : > { %679 = dma.hbm_to_vmem [thread:$0]  (!%p994_p7), %s258_s17, 512, %s260_s2, %s248_s10, %s872_s21, %s872_s21, %s873_s23  }
  0x2a   : > { %271 = sbr.rel (%p978_p13) target bundleno = 502 (0x1f6), region = 48 }
  0x2f   : > { %844 = dma.done.wait (%p171_p4), [#allocation3], 32  }
  0x30   : > { %846 = vsyncadd (%p171_p4), [#allocation3], 4294967264  ;;  %s1019_s26 = sand.u32 1, %s861_s25  }
  0x31   : > { %s645_s30 = sshll.u32 %s1019_s26, 5  ;;  %s279_s9 = scalar_lea.sflag [#allocation6], %s1019_s26 }
  0x32   : > { %s1025_s2 = scalar_lea.vmem [#allocation5], %s645_s30 }
  0x33   : > { %848 = dma.done.wait (%p963_p6), %s279_s9, 512  }
  0x34   : > { %850 = vsyncadd (%p963_p6), %s279_s9, 4294966784  ;;  %v874_v0 = vmov 2.0   ;;  %vm318_vm0 = vcmask 64512   ;;  %v315_v2 = vld [vmem:[%s1139_s0 + $0x8] sm:$0xff]  ;;  %v317_v3 = vld [vmem:[%s1139_s0 + $0x18] sm:$0xff]  ;;  %v875_v35 = vmov 8.0  }
  0x35   : > { %727 = vrcp.f32 %v874_v0  ;;  %v314_v4 = vld [vmem:[%s1139_s0] sm:$0xff]  ;;  %v316_v6 = vld [vmem:[%s1139_s0 + $0x10] sm:$0xff]  ;;  %v322_v7 = vsel %vm318_vm0, %v315_v2, 0.0  ;;  %v323_v8 = vsel %vm318_vm0, %v317_v3, 0.0  ;;  %v350_v12 = vld [vmem:[%s1140_s1 + $0x8] sm:$0xff]  ;;  %vm408_vm4 = vcmask 130048  }
  0x36   : > { %v319_v10 = vsel %vm318_vm0, %v314_v4, 0.0  ;;  %v320_v11 = vsel %vm318_vm0, %v316_v6, 0.0  ;;  %v352_v13 = vld [vmem:[%s1140_s1 + $0x18] sm:$0xff]  ;;  %v349_v14 = vld [vmem:[%s1140_s1] sm:$0xff]  ;;  %v351_v15 = vld [vmem:[%s1140_s1 + $0x10] sm:$0xff]  ;;  %v324_v17 = vadd.f32 %v323_v8, %v322_v7  ;;  %v356_v19 = vsel %vm318_vm0, %v350_v12, 0.0 }
  0x37   : > { %v321_v18 = vadd.f32 %v320_v11, %v319_v10  ;;  %v357_v21 = vsel %vm318_vm0, %v352_v13, 0.0  ;;  %v353_v22 = vsel %vm318_vm0, %v349_v14, 0.0  ;;  %v354_v23 = vsel %vm318_vm0, %v351_v15, 0.0  ;;  %v407_v37 = vld [vmem:[%s1142_s3 + $0x8] sm:$0xff]  ;;  %v406_v38 = vld [vmem:[%s1142_s3] sm:$0xff]  ;;  %v468_v63 = vld [vmem:[%s1144_s5 + $0x30] sm:$0xff] }
  0x38   : > { %v358_v27 = vadd.f32 %v357_v21, %v356_v19  ;;  %v355_v28 = vadd.f32 %v354_v23, %v353_v22  ;;  %729 = vrcp.f32 %v875_v35  ;;  %429 = vmatpush.msra.mxu0 %v407_v37  ;;  %v369_v46 = vld [vmem:[#allocation2] sm:$0x3]  ;;  %v469_v0 = vld [vmem:[%s1144_s5 + $0x38] sm:$0xff]  ;;  %489 = vmatpush.msra.mxu1 %v468_v63  ;;  %vm470_vm12 = vcmask 261120   ;;  %s313_s18 = scalar_lea.vmem [#allocation7], %s645_s30  ;;  %s659_s20 = sshll.u32 %s939_s28, 5 }
  0x39   : > { %v370_v48 = vperm.slane %v369_v46, 0  ;;  %v375_v51 = vperm.slane %v369_v46, 1  ;;  %512 = vmatpush.msra.mxu2 %v469_v0  ;;  %660 = vmatpush.msra.mxu3 %v468_v63  ;;  %v438_v23 = vld [vmem:[%s1143_s4] sm:$0x1]  ;;  %s547_s21 = scalar_lea.hbm %s1146_s7, %s659_s20  ;;  %s548_s23 = sshll.u32 %s313_s18, 4  ;;  %s549_s23 = int_to_ptr.vmem [resolvable:$true] %s548_s23 }
  0x3a   : > { %430 = vmatpush.msra.mxu0 %v406_v38  ;;  %s550_s9 = sshll.u32 %s547_s21, 4  ;;  %s536_s28 = scalar_lea.sflag [#allocation4], %s1019_s26  ;;  %s551_s9 = int_to_ptr.hbm [resolvable:$true] %s550_s9 }
  0x3b   : > { %v728_v1 = vpop.eup %727  ;;  %s813_s30 = sshra.s32 %s551_s9, 4  ;;  %s814_s30 = int_to_ptr.hbm [resolvable:$true] %s813_s30 }
  0x3c   : > { %v326_v5 = vmul.f32 2.0, %v728_v1  ;;  %vm330_vm1 = vweird.f32 %v728_v1  ;;  %s815_s10 = scalar_lea.hbm %s814_s30, 32  ;;  %p820_p0 = scmp.lt.s32.totalorder %s814_s30, %s1146_s7 }
  0x3d   : > { %p816_p4 = scmp.ne.s32.totalorder %s814_s30, %s815_s10 }
  0x3e   : > { %v327_v9 = vsub.f32 1.0, %v326_v5  ;;  %v730_v36 = vpop.eup %729 }
  0x3f   : > { %v341_v39 = vmul.f32 8.0, %v730_v36  ;;  %vm345_vm2 = vweird.f32 %v730_v36  ;;  %p817_p6 = pnand %p816_p4, %p970_p11 }
  0x40   : > { %v328_v16 = vmul.f32 %v728_v1, %v327_v9 }
  0x41   : > { %v342_v40 = vsub.f32 1.0, %v341_v39  ;;  %p818_p13 = pneg %p817_p6 }
  0x42   : > { %v329_v20 = vadd.f32 %v728_v1, %v328_v16 }
  0x43   : > { %v343_v41 = vmul.f32 %v730_v36, %v342_v40 }
  0x44   : > { %v331_v24 = vsel %vm330_vm1, %v728_v1, %v329_v20 }
  0x45   : > { %v333_v25 = vmul.f32 %v331_v24, %v324_v17  ;;  %v332_v26 = vmul.f32 %v331_v24, %v321_v18  ;;  %v360_v31 = vmul.f32 %v358_v27, %v331_v24  ;;  %v359_v32 = vmul.f32 %v355_v28, %v331_v24  ;;  %v466_v27 = vld [vmem:[%s1144_s5 + $0x20] sm:$0xff]  ;;  %v467_v28 = vld [vmem:[%s1144_s5 + $0x28] sm:$0xff] }
  0x46   : > { %v344_v42 = vadd.f32 %v730_v36, %v343_v41  ;;  %v439_v24 = vmul.f32 1.442695, %v438_v23  ;;  %490 = vmatpush.msra.mxu1 %v466_v27  ;;  %513 = vmatpush.msra.mxu2 %v467_v28 }
  0x47   : > { %v337_v29 = vsel %vm318_vm0, %v333_v25, 0.0  ;;  %v334_v30 = vsel %vm318_vm0, %v332_v26, 0.0  ;;  %v364_v33 = vsel %vm318_vm0, %v360_v31, 0.0  ;;  %v361_v34 = vsel %vm318_vm0, %v359_v32, 0.0  ;;  %661 = vmatpush.msra.mxu3 %v466_v27  ;;  %v462_v31 = vld [vmem:[%s1144_s5] sm:$0xff]  ;;  %v463_v32 = vld [vmem:[%s1144_s5 + $0x8] sm:$0xff] }
  0x48   : > { %338 = vadd.xlane.f32.xlu1 %v337_v29  ;;  %335 = vadd.xlane.f32.xlu0 %v334_v30  ;;  %v346_v45 = vsel %vm345_vm2, %v730_v36, %v344_v42  ;;  %v464_v29 = vld [vmem:[%s1144_s5 + $0x10] sm:$0xff]  ;;  %v465_v30 = vld [vmem:[%s1144_s5 + $0x18] sm:$0xff] }
  0x49   : > { %491 = vmatpush.msra.mxu1 %v464_v29  ;;  %514 = vmatpush.msra.mxu2 %v465_v30 }
  0x4a   : > { %662 = vmatpush.msra.mxu3 %v464_v29 }
  0x4b   : > { %492 = vmatpush.msra.mxu1 %v462_v31  ;;  %515 = vmatpush.msra.mxu2 %v463_v32 }
  0x4c   : > { %663 = vmatpush.msra.mxu3 %v462_v31 }
  0x50   : > { %365 = vadd.xlane.f32.xlu1 %v364_v33  ;;  %362 = vadd.xlane.f32.xlu0 %v361_v34 }
  0xbb   : > { %v339_v43 = vpop.xlane.xlu1 %338  ;;  %v336_v44 = vpop.xlane.xlu0 %335 }
  0xbc   : > { %v348_v47 = vmul.f32 %v346_v45, %v339_v43  ;;  %v347_v49 = vmul.f32 %v346_v45, %v336_v44 }
  0xbe   : > { %v372_v50 = vsub.f32 %v348_v47, %v370_v48  ;;  %v371_v54 = vsub.f32 %v347_v49, %v370_v48  ;;  %v523_v49 = vld [vmem:[%s1025_s2] sm:$0xff] }
  0xc0   : > { %v374_v57 = vmul.f32 %v372_v50, %v372_v50  ;;  %v373_v60 = vmul.f32 %v371_v54, %v371_v54 }
  0xc3   : > { %v366_v52 = vpop.xlane.xlu1 %365  ;;  %v363_v53 = vpop.xlane.xlu0 %362 }
  0xc4   : > { %v368_v55 = vmul.f32 %v366_v52, %v346_v45  ;;  %v367_v56 = vmul.f32 %v363_v53, %v346_v45  ;;  %v524_v52 = vld [vmem:[%s1025_s2 + $0x8] sm:$0xff] }
  0xc6   : > { %v377_v58 = vsub.f32 %v368_v55, %v375_v51  ;;  %v376_v59 = vsub.f32 %v367_v56, %v375_v51  ;;  %v525_v55 = vld [vmem:[%s1025_s2 + $0x10] sm:$0xff]  ;;  %v526_v56 = vld [vmem:[%s1025_s2 + $0x18] sm:$0xff]  ;;  %s819_s2 = scalar_lea.hbm %s1146_s7, 64 }
  0xc7   : > { %p821_p7 = scmp.lt.s32.totalorder %s819_s2, %s815_s10 }
  0xc8   : > { %v379_v61 = vmul.f32 %v377_v58, %v377_v58  ;;  %v378_v62 = vmul.f32 %v376_v59, %v376_v59 }
  0xc9   : > { %p822_p5 = por %p821_p7, %p820_p0 }
  0xca   : > { %v381_v1 = vadd.f32 %v379_v61, %v374_v57  ;;  %v380_v2 = vadd.f32 %v378_v62, %v373_v60 }
  0xcb   : > { %p823_p8 = pnand %p822_p5, %p818_p13 }
  0xcc   : > { %731 = vrsqrt.f32 %v380_v2  ;;  %vm389_vm3 = vcmp.eq.f32.partialorder %v380_v2, inf  ;;  %v392_v16 = vand.u32 2147483648, %v380_v2  ;;  %vm391_vm5 = vcmp.eq.f32.partialorder %v380_v2, 0.0 }
  0xcd   : > { %733 = vrsqrt.f32 %v381_v1  ;;  %vm401_vm6 = vcmp.eq.f32.partialorder %v381_v1, inf  ;;  %v404_v21 = vand.u32 2147483648, %v381_v1  ;;  %vm403_vm7 = vcmp.eq.f32.partialorder %v381_v1, 0.0 }
  0xce   : > { %735 = vpow2.f32 %v439_v24 }
  0xd2   : > { %v732_v3 = vpop.eup %731 }
  0xd3   : > { %v734_v4 = vpop.eup %733  ;;  %v383_v5 = vmul.f32 %v732_v3, %v380_v2 }
  0xd4   : > { %v395_v6 = vmul.f32 %v734_v4, %v381_v1  ;;  %v736_v25 = vpop.eup %735 }
  0xd5   : > { %v384_v7 = vmul.f32 %v732_v3, %v383_v5  ;;  %v442_v26 = vperm.slane %v736_v25, 0 }
  0xd6   : > { %v396_v8 = vmul.f32 %v734_v4, %v395_v6 }
  0xd7   : > { %v385_v9 = vmul.f32 0.5, %v384_v7  ;;  %737 = vrcp.f32 %v442_v26  ;;  %vm449_vm8 = vweird.f32 %v442_v26  ;;  %v455_v37 = vand.u32 2147483648, %v442_v26 }
  0xd8   : > { %v397_v10 = vmul.f32 0.5, %v396_v8  ;;  %v453_v39 = vand.u32 2147483647, %v442_v26 }
  0xd9   : > { %v386_v11 = vsub.f32 1.5, %v385_v9  ;;  %v456_v40 = vor.u32 1.1754944e-38, %v455_v37 }
  0xda   : > { %v398_v12 = vsub.f32 1.5, %v397_v10  ;;  %vm454_vm11 = vcmp.eq.f32.partialorder %v453_v39, 8.507059e+37 }
  0xdb   : > { %v387_v13 = vmul.f32 %v732_v3, %v386_v11 }
  0xdc   : > { %v399_v15 = vmul.f32 %v734_v4, %v398_v12 }
  0xdd   : > { %v388_v14 = vmul.f32 %v387_v13, %v380_v2  ;;  %v738_v33 = vpop.eup %737 }
  0xde   : > { %v400_v19 = vmul.f32 %v399_v15, %v381_v1  ;;  %v445_v34 = vmul.f32 %v738_v33, %v442_v26  ;;  %vm450_vm9 = vweird.f32 %v738_v33 }
  0xdf   : > { %v390_v17 = vsel %vm389_vm3, %v380_v2, %v388_v14  ;;  %vm451_vm10 = vmor %vm449_vm8, %vm450_vm9 }
  0xe0   : > { %v393_v18 = vsel %vm391_vm5, %v392_v16, %v390_v17  ;;  %v402_v20 = vsel %vm401_vm6, %v381_v1, %v400_v19  ;;  %v446_v35 = vsub.f32 1.0, %v445_v34 }
  0xe1   : > { %647 = vmatmul.msk.f32.vlgmr.msra.gmra.mxu0 %vm408_vm4, %v393_v18  ;;  %v405_v22 = vsel %vm403_vm7, %v404_v21, %v402_v20 }
  0xe2   : > { %v447_v36 = vmul.f32 %v738_v33, %v446_v35 }
  0xe4   : > { %v448_v38 = vadd.f32 %v738_v33, %v447_v36 }
  0xe6   : > { %v452_v41 = vsel %vm451_vm10, %v738_v33, %v448_v38 }
  0xe7   : > { %v457_v42 = vsel %vm454_vm11, %v456_v40, %v452_v41 }
  0xe9   : > { %648 = vmatmul.msk.f32.gmra.mxu0 %vm408_vm4, %v405_v22 }
 0x15e   : > { %v432_v43 = vpop.f32.mrf.mxu0 }
 0x15f   : > { %v458_v44 = vmul.f32 %v457_v42, %v432_v43 }
 0x161   : > { %v460_v45 = vmul.f32 %v458_v44, %v458_v44 }
 0x163   : > { %649 = vmatmul.msk.f32.vlgmr.msra.gmra.mxu1 %vm470_vm12, %v460_v45  ;;  %651 = vmatmul.msk.f32.vlgmr.msra.gmra.mxu2 %vm470_vm12, %v460_v45 }
 0x166   : > { %v435_v46 = vpop.f32.mrf.mxu0 }
 0x167   : > { %v459_v47 = vmul.f32 %v457_v42, %v435_v46 }
 0x169   : > { %v461_v48 = vmul.f32 %v459_v47, %v459_v47 }
 0x16b   : > { %650 = vmatmul.msk.f32.vlgmr.msra.gmra.mxu3 %vm470_vm12, %v461_v48  ;;  %652 = vmatmul.msk.f32.gmra.mxu2 %vm470_vm12, %v461_v48 }
 0x1e0   : > { %v494_v50 = vpop.f32.mrf.mxu1 }
 0x1e1   : > { %v527_v51 = vadd.f32 %v523_v49, %v494_v50 }
 0x1e3   : > { %531 = vst [vmem:[%s313_s18] sm:$0xff] %v527_v51 }
 0x1e6   : > { %v517_v53 = vpop.f32.mrf.mxu2 }
 0x1e7   : > { %v528_v54 = vadd.f32 %v524_v52, %v517_v53 }
 0x1e9   : > { %532 = vst [vmem:[%s313_s18 + $0x8] sm:$0xff] %v528_v54 }
 0x1ee   : > { %v497_v57 = vpop.f32.mrf.mxu3  ;;  %v520_v58 = vpop.f32.mrf.mxu2 }
 0x1ef   : > { %v529_v59 = vadd.f32 %v525_v55, %v497_v57  ;;  %v530_v60 = vadd.f32 %v526_v56, %v520_v58 }
 0x1f1   : > { %533 = vst [vmem:[%s313_s18 + $0x10] sm:$0xff] %v529_v59 }
 0x1f2   : > { %534 = vst [vmem:[%s313_s18 + $0x18] sm:$0xff] %v530_v60 }
 0x1f3   : > { %826 = shalt.err (!%p823_p8)
}
 0x1f4   : > { %s876_s26 = smov 256   ;;  %s877_s19 = smov 16  }
 0x1f5   : > { %670 = dma.vmem_to_hbm [thread:$0]  (%p970_p11), %s549_s23, 512, %s551_s9, %s536_s28, %s876_s26, %s876_s26, %s877_s19  }
 0x1f6 PF: > { %s565_s11 = sand.u32 1, %s857_s24   ;;  %p1161_p9 = scmp.ge.s32.totalorder %s869_s27, 2 }
 0x1f7   : > { %s566_s12 = scalar_lea.sflag [#allocation4], %s565_s11 }
 0x1f8   : > { %p681_p10 = pnand %p1161_p9, %p974_p12 }
 0x1fa   : > { %p682_p1 = pneg %p681_p10 }
 0x1fc   : > { %852 = dma.done.wait (%p682_p1), %s566_s12, 512  }
 0x1fd   : > { %854 = vsyncadd (%p682_p1), %s566_s12, 4294966784  ;;  %s1162_s27 = sld [smem:[#allocation12_spill]]  ;;  %s1165_s24 = smov %s861_s25 }
 0x1fe   : > { %s1163_s18 = sld [smem:[#allocation11_spill]] }
 0x1ff   : > { %s1164_s26 = sld [smem:[#allocation13_spill]] }
 0x203   : > { %p21_p2 = scmp.ge.s32.totalorder %s1162_s27, 4  }
 0x204   : > { %s1166_s25 = smov %s1163_s18 }
 0x205   :  { %23 = sbr.rel (!%p21_p2) target bundleno = 8 (0x8), region = 98 }
 0x20a   :  { %572 = vsyncpa [#allocation3], 1 }
 0x20b   :  { %574 = vsyncpa [#allocation3 + $0x1], 1 }
 0x20c   :  { %575 = vsyncpa [#allocation6], 1 }
 0x20d   :  { %577 = vsyncpa [#allocation6 + $0x1], 1 }
 0x20e   :  { %578 = vsyncpa [#allocation4], 1 }
 0x20f   :  { %580 = vsyncpa [#allocation4 + $0x1], 1 }

</bundles_post_ra>
